<compile_context>
chip_gen: v5e
topology: v5e:2x2
jax: 0.10.0
libtpu: 0.0.40
codegen_flags: <defaults>
</compile_context>

<pallas_src>
import functools

import jax
import jax.numpy as jnp
from jax.experimental import pallas as pl
from jax.experimental.pallas import tpu as pltpu

_LANE = 128  # TPU lane width


def _round_up(x, m):
    return ((x + m - 1) // m) * m


def _vmem_limit_bytes():
    """Per-generation VMEM limit: ~85% of physical (v7x ~54 MiB, v5e/v6e ~108 MiB)."""
    try:
        phys = pltpu.get_tpu_info().vmem_capacity_bytes
    except Exception:  # pragma: no cover - conservative fallback
        phys = 64 * 1024 * 1024
    return int(phys * 0.85)


def _choose_block_graphs(nodes_per_graph, hp, vmem_limit):
    """Pick graphs-per-block from the VMEM budget (weights resident single-buffered,
    features/out double-buffered, ~3 f32 (tb, Hp) in-kernel temporaries)."""
    weight_bytes = hp * hp * 2 + hp * 4 + hp * _LANE * 2       # w1 bf16 + b1 f32 + w2 bf16
    per_graph_feat = nodes_per_graph * hp * 4                  # f32 feature bytes / graph
    per_graph_total = 2 * per_graph_feat + 2 * _LANE * 4 + 3 * hp * 4
    budget = max(vmem_limit - weight_bytes, 2 * 1024 * 1024)
    tb_budget = budget // per_graph_total
    tb_feat = max(8, (8 * 1024 * 1024) // max(per_graph_feat, 1))   # ~8 MiB feature block
    tb = min(tb_budget, max(tb_feat, 256))                          # prefer >=256 rows for MXU fill
    return max(8, min(int(tb), 2048))


def _head_kernel(feat_ref, w1_ref, b1_ref, w2_ref, b2_ref, out_ref, *, n_nodes, hp):
    # feat_ref: (tb, n_nodes*hp) native dtype   w1_ref: (hp, hp) bf16 (1/N folded)
    # b1_ref:   (1, hp) f32                     w2_ref: (hp, 128) bf16 (col 0 = w_out)
    # b2_ref:   (1, 1)  f32 in SMEM             out_ref: (tb, 128) f32

    # Node sum as lane-dense slice adds (f32 accumulation, bounded live set,
    # no XLU sublane reduce, result lands directly in MXU-LHS layout).
    x = feat_ref[:, 0:hp].astype(jnp.float32)                  # (tb, hp)
    for n in range(1, n_nodes):
        x = x + feat_ref[:, n * hp:(n + 1) * hp].astype(jnp.float32)

    # dropout -> identity (eval mode)

    # dense + tanh: bf16 MXU inputs, f32 accumulation; tanh in f32 (v5e-safe EUP path)
    h = jnp.dot(x.astype(jnp.bfloat16), w1_ref[...],
                preferred_element_type=jnp.float32) + b1_ref[...]
    h = jnp.tanh(h)                                            # (tb, hp) f32

    # dropout -> identity (eval mode)

    # out_proj into a lane-dense (tb, 128) slab; real result lives in column 0
    y = jnp.dot(h.astype(jnp.bfloat16), w2_ref[...],
                preferred_element_type=jnp.float32)
    out_ref[...] = y + b2_ref[0, 0]                            # (tb, 128)


def gnn_classification_head(features, num_graphs, w_dense, b_dense, w_out, b_out,
                            *, block_graphs=None):
    """features: (num_nodes, H); num_graphs: static int (== max(batch) + 1)."""
    num_nodes, hidden = features.shape
    if num_nodes % num_graphs != 0:
        raise ValueError("num_nodes must be divisible by num_graphs "
                         "(equal nodes per graph, matching torch .reshape semantics)")
    nodes_per_graph = num_nodes // num_graphs
    hp = _round_up(hidden, _LANE)

    # Features stay in their native dtype; only lane-pad when H is not already
    # a multiple of 128 (realistic hidden sizes are; the pad columns are zero).
    feats = features
    if hp != hidden:
        feats = jnp.pad(feats, ((0, 0), (0, hp - hidden)))
    # Free row-major reshape: (B*N, Hp) -> (B, N*Hp).  No graph-axis padding.
    feats2d = feats.reshape(num_graphs, nodes_per_graph * hp)

    vmem_limit = _vmem_limit_bytes()
    if block_graphs is None:
        tb = _choose_block_graphs(nodes_per_graph, hp, vmem_limit)
    else:
        tb = int(block_graphs)
    if tb >= num_graphs:
        tb = num_graphs                    # single block == full graph axis (always legal)
    else:
        tb = max(8, (tb // 8) * 8)         # sublane-aligned graph tile
    grid = (pl.cdiv(num_graphs, tb),)

    # PyTorch Linear stores W as (out, in): pre-transpose, fold the 1/N mean scale,
    # zero-pad to lane-aligned Hp, bf16 on the MXU path.
    w1_t = jnp.pad(w_dense.T.astype(jnp.float32) / float(nodes_per_graph),
                   ((0, hp - hidden), (0, hp - hidden))).astype(jnp.bfloat16)   # (hp, hp)
    b1 = jnp.pad(b_dense.astype(jnp.float32), (0, hp - hidden)).reshape(1, hp)  # (1, hp)
    w2_pad = jnp.zeros((hp, _LANE), jnp.bfloat16).at[:hidden, 0].set(
        w_out.reshape(hidden).astype(jnp.bfloat16))                             # (hp, 128)
    b2 = b_out.reshape(1, 1).astype(jnp.float32)                                # (1,1) -> SMEM

    kernel = functools.partial(_head_kernel, n_nodes=nodes_per_graph, hp=hp)

    out = pl.pallas_call(
        kernel,
        out_shape=jax.ShapeDtypeStruct((num_graphs, _LANE), jnp.float32),
        grid=grid,
        in_specs=[
            pl.BlockSpec((tb, nodes_per_graph * hp), lambda i: (i, 0)),
            # grid-invariant weights: single-buffered (halves weight VMEM residency)
            pl.BlockSpec((hp, hp), lambda i: (0, 0), pipeline_mode=pl.Buffered(1)),
            pl.BlockSpec((1, hp), lambda i: (0, 0), pipeline_mode=pl.Buffered(1)),
            pl.BlockSpec((hp, _LANE), lambda i: (0, 0), pipeline_mode=pl.Buffered(1)),
            pl.BlockSpec(memory_space=pltpu.MemorySpace.SMEM),
        ],
        out_specs=pl.BlockSpec((tb, _LANE), lambda i: (i, 0)),
        compiler_params=pltpu.CompilerParams(
            dimension_semantics=("parallel",),
            vmem_limit_bytes=vmem_limit,
        ),
    )(feats2d, w1_t, b1, w2_pad, b2)

    # slice the real (single) output column
    return out[:, :1]


def _init_params(key, hidden):
    # PyTorch nn.Linear default init: U(-1/sqrt(fan_in), 1/sqrt(fan_in))
    k1, k2, k3, k4 = jax.random.split(key, 4)
    bound = 1.0 / (hidden ** 0.5)
    w_dense = jax.random.uniform(k1, (hidden, hidden), jnp.float32, -bound, bound)
    b_dense = jax.random.uniform(k2, (hidden,), jnp.float32, -bound, bound)
    w_out = jax.random.uniform(k3, (1, hidden), jnp.float32, -bound, bound)
    b_out = jax.random.uniform(k4, (1,), jnp.float32, -bound, bound)
    return w_dense, b_dense, w_out, b_out


if __name__ == "__main__":
    key = jax.random.PRNGKey(0)
    k_feat, k_param = jax.random.split(key)

    num_graphs = 32          # B
    nodes_per_graph = 8      # N
    hidden = 128             # H (lane-aligned -> no feature padding / extra copies)

    features = jax.random.normal(
        k_feat, (num_graphs * nodes_per_graph, hidden), jnp.float32)
    batch = jnp.repeat(jnp.arange(num_graphs, dtype=jnp.int32), nodes_per_graph)
    assert int(batch.shape[0]) == num_graphs * nodes_per_graph  # API parity only

    w_dense, b_dense, w_out, b_out = _init_params(k_param, hidden)

    # block_graphs=16 -> grid=(2,) to exercise the pipelined graph-axis tiling
    # (production callers leave block_graphs=None for VMEM-budget auto-sizing).
    out = gnn_classification_head(features, num_graphs, w_dense, b_dense,
                                  w_out, b_out, block_graphs=16)
    out = jax.block_until_ready(out)

    # reference in plain f32 JAX (eval-mode dropout == identity)
    feats = features.reshape(num_graphs, nodes_per_graph, hidden)
    x_ref = jnp.mean(feats, axis=1)
    x_ref = jnp.tanh(x_ref @ w_dense.T + b_dense)
    ref = x_ref @ w_out.T + b_out

    assert out.shape == (num_graphs, 1)
    # bf16 MXU inputs -> slightly looser tolerance
    assert jnp.allclose(out, ref, atol=1e-2, rtol=1e-2)

    print("KERNEL_OK")
</pallas_src>

<mosaic_0001>
module attributes {stable_mosaic.version = 11 : i64} {
  func.func @_head_kernel(%arg0: i32, %arg1: memref<16x1024xf32, #tpu.memory_space<vmem>>, %arg2: memref<128x128xbf16, #tpu.memory_space<vmem>>, %arg3: memref<1x128xf32, #tpu.memory_space<vmem>>, %arg4: memref<128x128xbf16, #tpu.memory_space<vmem>>, %arg5: memref<1x1xf32, #tpu.memory_space<smem>>, %arg6: memref<16x128xf32, #tpu.memory_space<vmem>>) attributes {dimension_semantics = [#tpu.dimension_semantics<parallel>], iteration_bounds = array<i64: 2>, scalar_prefetch = 0 : i64, scratch_operands = 0 : i64, tpu.core_type = #tpu.core_type<tc>, window_params = [{transform_indices = @transform_0, window_bounds = array<i64: 16, 1024>}, {pipeline_mode = #tpu.pipeline_mode<synchronous>, transform_indices = @transform_1, window_bounds = array<i64: 128, 128>}, {pipeline_mode = #tpu.pipeline_mode<synchronous>, transform_indices = @transform_2, window_bounds = array<i64: 1, 128>}, {pipeline_mode = #tpu.pipeline_mode<synchronous>, transform_indices = @transform_3, window_bounds = array<i64: 128, 128>}, {transform_indices = @transform_4, window_bounds = array<i64: 1, 1>}, {transform_indices = @transform_5, window_bounds = array<i64: 16, 128>}]} {
    %c0 = arith.constant 0 : index
    %c0_0 = arith.constant 0 : index
    %0 = vector.load %arg1[%c0, %c0_0] : memref<16x1024xf32, #tpu.memory_space<vmem>>, vector<16x128xf32>
    %c0_1 = arith.constant 0 : index
    %c128 = arith.constant 128 : index
    %1 = vector.load %arg1[%c0_1, %c128] : memref<16x1024xf32, #tpu.memory_space<vmem>>, vector<16x128xf32>
    %2 = arith.addf %0, %1 : vector<16x128xf32>
    %c0_2 = arith.constant 0 : index
    %c256 = arith.constant 256 : index
    %3 = vector.load %arg1[%c0_2, %c256] : memref<16x1024xf32, #tpu.memory_space<vmem>>, vector<16x128xf32>
    %4 = arith.addf %2, %3 : vector<16x128xf32>
    %c0_3 = arith.constant 0 : index
    %c384 = arith.constant 384 : index
    %5 = vector.load %arg1[%c0_3, %c384] : memref<16x1024xf32, #tpu.memory_space<vmem>>, vector<16x128xf32>
    %6 = arith.addf %4, %5 : vector<16x128xf32>
    %c0_4 = arith.constant 0 : index
    %c512 = arith.constant 512 : index
    %7 = vector.load %arg1[%c0_4, %c512] : memref<16x1024xf32, #tpu.memory_space<vmem>>, vector<16x128xf32>
    %8 = arith.addf %6, %7 : vector<16x128xf32>
    %c0_5 = arith.constant 0 : index
    %c640 = arith.constant 640 : index
    %9 = vector.load %arg1[%c0_5, %c640] : memref<16x1024xf32, #tpu.memory_space<vmem>>, vector<16x128xf32>
    %10 = arith.addf %8, %9 : vector<16x128xf32>
    %c0_6 = arith.constant 0 : index
    %c768 = arith.constant 768 : index
    %11 = vector.load %arg1[%c0_6, %c768] : memref<16x1024xf32, #tpu.memory_space<vmem>>, vector<16x128xf32>
    %12 = arith.addf %10, %11 : vector<16x128xf32>
    %c0_7 = arith.constant 0 : index
    %c896 = arith.constant 896 : index
    %13 = vector.load %arg1[%c0_7, %c896] : memref<16x1024xf32, #tpu.memory_space<vmem>>, vector<16x128xf32>
    %14 = arith.addf %12, %13 : vector<16x128xf32>
    %15 = arith.truncf %14 : vector<16x128xf32> to vector<16x128xbf16>
    %c0_8 = arith.constant 0 : index
    %c0_9 = arith.constant 0 : index
    %16 = vector.load %arg2[%c0_8, %c0_9] : memref<128x128xbf16, #tpu.memory_space<vmem>>, vector<128x128xbf16>
    %cst = arith.constant dense<0.000000e+00> : vector<16x128xf32>
    %17 = tpu.matmul %15, %16, %cst {dimension_numbers = #tpu.dot_dimension_numbers<[1], [0], [0], [1], [0, 0, 1, 1], [], []>} : vector<16x128xbf16>, vector<128x128xbf16>, vector<16x128xf32> -> vector<16x128xf32>
    %c0_10 = arith.constant 0 : index
    %c0_11 = arith.constant 0 : index
    %18 = vector.load %arg3[%c0_10, %c0_11] : memref<1x128xf32, #tpu.memory_space<vmem>>, vector<1x128xf32>
    %19 = vector.broadcast %18 : vector<1x128xf32> to vector<16x128xf32>
    %20 = arith.addf %17, %19 : vector<16x128xf32>
    %21 = math.tanh %20 : vector<16x128xf32>
    %22 = arith.truncf %21 : vector<16x128xf32> to vector<16x128xbf16>
    %c0_12 = arith.constant 0 : index
    %c0_13 = arith.constant 0 : index
    %23 = vector.load %arg4[%c0_12, %c0_13] : memref<128x128xbf16, #tpu.memory_space<vmem>>, vector<128x128xbf16>
    %cst_14 = arith.constant dense<0.000000e+00> : vector<16x128xf32>
    %24 = tpu.matmul %22, %23, %cst_14 {dimension_numbers = #tpu.dot_dimension_numbers<[1], [0], [0], [1], [0, 0, 1, 1], [], []>} : vector<16x128xbf16>, vector<128x128xbf16>, vector<16x128xf32> -> vector<16x128xf32>
    %c0_15 = arith.constant 0 : index
    %c0_16 = arith.constant 0 : index
    %25 = memref.load %arg5[%c0_15, %c0_16] : memref<1x1xf32, #tpu.memory_space<smem>>
    %26 = vector.broadcast %25 : f32 to vector<16x128xf32>
    %27 = arith.addf %24, %26 : vector<16x128xf32>
    %c0_17 = arith.constant 0 : index
    %c0_18 = arith.constant 0 : index
    %28 = vector.load %arg6[%c0_17, %c0_18] : memref<16x128xf32, #tpu.memory_space<vmem>>, vector<16x128xf32>
    tpu.vector_store %arg6[%c0_17, %c0_18], %27 {strides = array<i32>} : memref<16x128xf32, #tpu.memory_space<vmem>>, vector<16x128xf32>,
    return
  }
  func.func @transform_0(%arg0: i32) -> (i32, i32) {
    %c0_i32 = arith.constant 0 : i32
    %c0_i32_0 = arith.constant 0 : i32
    return %arg0, %c0_i32 : i32, i32
  }
  func.func @transform_1(%arg0: i32) -> (i32, i32) {
    %c0_i32 = arith.constant 0 : i32
    %c0_i32_0 = arith.constant 0 : i32
    %c0_i32_1 = arith.constant 0 : i32
    return %c0_i32, %c0_i32_0 : i32, i32
  }
  func.func @transform_2(%arg0: i32) -> (i32, i32) {
    %c0_i32 = arith.constant 0 : i32
    %c0_i32_0 = arith.constant 0 : i32
    %c0_i32_1 = arith.constant 0 : i32
    return %c0_i32, %c0_i32_0 : i32, i32
  }
  func.func @transform_3(%arg0: i32) -> (i32, i32) {
    %c0_i32 = arith.constant 0 : i32
    %c0_i32_0 = arith.constant 0 : i32
    %c0_i32_1 = arith.constant 0 : i32
    return %c0_i32, %c0_i32_0 : i32, i32
  }
  func.func @transform_4(%arg0: i32) -> (i32, i32) {
    %c0_i32 = arith.constant 0 : i32
    %c0_i32_0 = arith.constant 0 : i32
    %c0_i32_1 = arith.constant 0 : i32
    return %c0_i32, %c0_i32_0 : i32, i32
  }
  func.func @transform_5(%arg0: i32) -> (i32, i32) {
    %c0_i32 = arith.constant 0 : i32
    %c0_i32_0 = arith.constant 0 : i32
    return %arg0, %c0_i32 : i32, i32
  }
}

</mosaic_0001>

<bundles_post_ra>
// kernel: tpu_custom_call.1
= control target key start
LH: loop header
LB: loop body
LE: loop exit
PB: predicated region body
PF: predicated region fallthrough
CT: control target
= control target key end

     0   :  { %s1137_s0 = inlined_call_operand.hbm [shape: f32[32,1024], index: 0, kind: input, shape index: {}]   ;;  %s1138_s1 = inlined_call_operand.hbm [shape: bf16[128,128], index: 1, kind: input, shape index: {}]   ;;  %s1139_s2 = inlined_call_operand.vmem [shape: f32[1,128], index: 2, kind: input, shape index: {}]   ;;  %s1140_s3 = inlined_call_operand.hbm [shape: bf16[128,128], index: 3, kind: input, shape index: {}]   ;;  %s1141_s4 = inlined_call_operand.<no memory space> [shape: f32[1,1], index: 4, kind: input, shape index: {}]   ;;  %s1142_s5 = inlined_call_operand.hbm [shape: f32[32,128], index: 5, kind: output, shape index: {}]  }
   0x1   :  { %10 = sst [smem:[#allocation2]] %s1141_s4 }
   0x2   :  { %11 = vsyncpa [#allocation4], 0 }
   0x3   :  { %13 = vsyncpa [#allocation4 + $0x1], 0 }
   0x4   :  { %14 = vsyncpa [#allocation7], 0 }
   0x5   :  { %15 = vsyncpa [#allocation5], 0 }
   0x6   :  { %17 = vsyncpa [#allocation5 + $0x1], 0  ;;  %s969_s20 = smov 0   ;;  %s971_s21 = smov 0  }
   0x7   :  { %s973_s22 = smov 0   ;;  %s975_s23 = smov 0  }
   0x8 LB: > { %s990_s4 = sadd.s32 4294967295, %s927_s23   ;;  %s588_s24 = sadd.s32 4294967294, %s927_s23   ;;  %s927_s23 = sphi %s975_s23, %s1152_s23   ;;  %s923_s22 = sphi %s973_s22, %s1151_s22   ;;  %s919_s21 = sphi %s971_s21, %s1150_s21   ;;  %s915_s20 = sphi %s969_s20, %s1149_s20  }
   0x9   : > { %p43_p0 = scmp.ne.s32.totalorder %s919_s21, %s915_s20  ;;  %p44_p1 = scmp.eq.s32.totalorder %s990_s4, 0 }
   0xa   : > { %p151_p2 = scmp.eq.s32.totalorder %s990_s4, 1  ;;  %p157_p3 = scmp.eq.s32.totalorder %s588_s24, 1 }
   0xb   : > { %p999_p4 = por %p44_p1, %p43_p0  ;;  %p589_p5 = scmp.ge.s32.totalorder %s927_s23, 1 }
   0xc   : > { %p1004_p6 = por %p157_p3, %p43_p0  ;;  %p164_p7 = scmp.lt.s32.totalorder %s927_s23, 3 }
   0xd   : > { %s175_s29 = sshll.u32 %s1138_s1, 4  ;;  %s929_s6 = smov [#allocation6]   ;;  %s176_s29 = int_to_ptr.hbm [resolvable:$true] %s175_s29 }
   0xe   : > { %p1012_p8 = pnand %p589_p5, %p164_p7  ;;  %s177_s7 = sshll.u32 %s929_s6, 4  ;;  %s178_s7 = int_to_ptr.vmem [resolvable:$true] %s177_s7 }
   0xf   : > { %s192_s10 = sshll.u32 %s1140_s3, 4  ;;  %s930_s11 = smov 64   ;;  %s193_s10 = int_to_ptr.hbm [resolvable:$true] %s192_s10 }
  0x10   : > { %p702_p9 = pneg %p1012_p8  ;;  %s931_s12 = smov 4  }
  0x11   : > { %s932_s13 = smov [#allocation8]   ;;  %s1029_s15 = sadd.s32 1, %s927_s23  }
  0x12   : > { %p703_p10 = pnand %p702_p9, %p44_p1  ;;  %s194_s14 = sshll.u32 %s932_s13, 4  ;;  %s195_s14 = int_to_ptr.vmem [resolvable:$true] %s194_s14 }
  0x13   : > { %s30_s16 = sadd.s32 1, %s923_s22  ;;  %s27_s17 = ssub.s32 %s927_s23, %s1029_s15 }
  0x14   : > { %705 = dma.hbm_to_vmem [thread:$0]  (!%p703_p10), %s176_s29, 1024, %s178_s7, [#allocation7], %s930_s11, %s930_s11, %s931_s12  }
  0x15   : > { %708 = dma.hbm_to_vmem [thread:$0]  (!%p703_p10), %s193_s10, 1024, %s195_s14, [#allocation7], %s930_s11, %s930_s11, %s931_s12  }
  0x16   : > { %p37_p12 = scmp.ne.s32.totalorder %s923_s22, %s919_s21  ;;  %p28_p13 = scmp.eq.s32.totalorder %s27_s17, 0 }
  0x17   : > { %p38_p0 = scmp.eq.s32.totalorder %s927_s23, 0  ;;  %p719_p5 = scmp.lt.s32.totalorder %s927_s23, 2 }
  0x18   : > { %p1039_p3 = por %p151_p2, %p37_p12  ;;  %s211_s24 = sand.u32 1, %s923_s22  }
  0x19   : > { %s1045_s19 = scalar_select %p28_p13, %s923_s22, %s30_s16  }
  0x1a   : > { %p39_p7 = por %p38_p0, %p37_p12  ;;  %s593_s27 = sshll.u32 %s211_s24, 7 }
  0x1b   : > { %s672_s28 = sshll.u32 %s927_s23, 7  ;;  %s215_s8 = scalar_lea.vmem [#allocation3], %s593_s27 }
  0x1c   : > { %s221_s7 = scalar_lea.hbm %s1137_s0, %s672_s28  ;;  %s224_s9 = sshll.u32 %s215_s8, 4  ;;  %s225_s9 = int_to_ptr.vmem [resolvable:$true] %s224_s9 }
  0x1d   : > { %s222_s10 = sshll.u32 %s221_s7, 4  ;;  %p1052_p2 = pnand %p719_p5, %p39_p7  ;;  %s223_s10 = int_to_ptr.hbm [resolvable:$true] %s222_s10 }
  0x1e   : > { %s212_s13 = scalar_lea.sflag [#allocation4], %s211_s24  ;;  %s827_s14 = sshra.s32 %s223_s10, 4  ;;  %s828_s14 = int_to_ptr.hbm [resolvable:$true] %s827_s14 }
  0x1f   : > { %s829_s16 = scalar_lea.hbm %s828_s14, 128  ;;  %p831_p10 = pneg %p1052_p2 }
  0x20   : > { %p830_p9 = scmp.ne.s32.totalorder %s828_s14, %s829_s16  ;;  %s834_s28 = scalar_lea.hbm %s1137_s0, 256 }
  0x21   : > { %p835_p0 = scmp.lt.s32.totalorder %s828_s14, %s1137_s0  ;;  %p836_p5 = scmp.lt.s32.totalorder %s834_s28, %s829_s16 }
  0x22   : > { %p832_p12 = pnand %p831_p10, %p830_p9 }
  0x23   : > { %p837_p7 = por %p836_p5, %p835_p0 }
  0x24   : > { %p833_p13 = pneg %p832_p12 }
  0x26   : > { %p838_p11 = pnand %p837_p7, %p833_p13 }
  0x28   : > { %841 = shalt.err (!%p838_p11)
}
  0x29   : > { %s933_s24 = smov 1024   ;;  %236 = sbr.rel (%p1012_p8) target bundleno = 366 (0x16e), region = 40 }
  0x2a   : > { %712 = dma.hbm_to_vmem [thread:$0]  (!%p1052_p2), %s223_s10, 2048, %s225_s9, %s212_s13, %s933_s24, %s933_s24, %s930_s11  }
  0x2b   : > { %s1070_s7 = sand.u32 (!%p1012_p8), 1, %s919_s21  }
  0x2c   : > { %s598_s8 = sshll.u32 (!%p1012_p8), %s1070_s7, 7  ;;  %s239_s14 = scalar_lea.sflag (!%p1012_p8), [#allocation4], %s1070_s7 }
  0x2d   : > { %s1074_s16 = scalar_lea.vmem (!%p1012_p8), [#allocation3], %s598_s8 }
  0x2e   : > { %902 = dma.done.wait (%p999_p4), %s239_s14, 2048  }
  0x2f   : > { %904 = vsyncadd (%p999_p4), %s239_s14, 4294965248 }
  0x30   : > { %906 = dma.done.wait (%p44_p1), [#allocation7], 2048  }
  0x31   : > { %908 = vsyncadd (%p44_p1), [#allocation7], 4294965248  ;;  %v680_v0 = vld [vmem:[#allocation6 + $0x38] sm:$0xff]  ;;  %v679_v1 = vld [vmem:[#allocation6 + $0x30] sm:$0xff]  ;;  %s414_s11 = sld [smem:[#allocation2]]  ;;  %s601_s9 = sshll.u32 %s1070_s7, 4 }
  0x32   : > { %381 = vmatpush.bf16.msra.mxu0 %v680_v0  ;;  %v282_v2 = vld [vmem:[%s1074_s16] sm:$0xff]  ;;  %v284_v4 = vld [vmem:[%s1074_s16 + $0x8] sm:$0xff]  ;;  %v288_v8 = vld [vmem:[%s1074_s16 + $0x10] sm:$0xff]  ;;  %s689_s10 = sshll.u32 %s990_s4, 4  ;;  %s279_s27 = scalar_lea.vmem [#allocation9], %s601_s9 }
  0x33   : > { %v283_v3 = vld [vmem:[%s1074_s16 + $0x40] sm:$0xff]  ;;  %v285_v5 = vld [vmem:[%s1074_s16 + $0x48] sm:$0xff]  ;;  %v286_v6 = vadd.f32 %v284_v4, %v282_v2  ;;  %v289_v9 = vld [vmem:[%s1074_s16 + $0x50] sm:$0xff]  ;;  %s492_s17 = scalar_lea.hbm %s1142_s5, %s689_s10  ;;  %s493_s28 = sshll.u32 %s279_s27, 4  ;;  %s494_s28 = int_to_ptr.vmem [resolvable:$true] %s493_s28 }
  0x34   : > { %v287_v7 = vadd.f32 %v285_v5, %v283_v3  ;;  %v678_v10 = vld [vmem:[#allocation6 + $0x28] sm:$0xff]  ;;  %v292_v13 = vld [vmem:[%s1074_s16 + $0x18] sm:$0xff]  ;;  %v677_v16 = vld [vmem:[#allocation6 + $0x20] sm:$0xff]  ;;  %s495_s29 = sshll.u32 %s492_s17, 4  ;;  %s481_s6 = scalar_lea.sflag [#allocation5], %s1070_s7  ;;  %s496_s29 = int_to_ptr.hbm [resolvable:$true] %s495_s29 }
  0x35   : > { %v290_v11 = vadd.f32 %v288_v8, %v286_v6  ;;  %v293_v14 = vld [vmem:[%s1074_s16 + $0x58] sm:$0xff]  ;;  %v296_v19 = vld [vmem:[%s1074_s16 + $0x20] sm:$0xff]  ;;  %v687_v21 = vld [vmem:[#allocation8 + $0x30] sm:$0xff]  ;;  %s871_s24 = sshra.s32 %s496_s29, 4  ;;  %s872_s24 = int_to_ptr.hbm [resolvable:$true] %s871_s24 }
  0x36   : > { %382 = vmatpush.bf16.msra.mxu0 %v679_v1  ;;  %v291_v12 = vadd.f32 %v289_v9, %v287_v7  ;;  %v688_v15 = vld [vmem:[#allocation8 + $0x38] sm:$0xff]  ;;  %v297_v20 = vld [vmem:[%s1074_s16 + $0x60] sm:$0xff]  ;;  %v300_v25 = vld [vmem:[%s1074_s16 + $0x28] sm:$0xff]  ;;  %s873_s4 = scalar_lea.hbm %s872_s24, 16  ;;  %p878_p11 = scmp.lt.s32.totalorder %s872_s24, %s1142_s5 }
  0x37   : > { %v294_v17 = vadd.f32 %v292_v13, %v290_v11  ;;  %464 = vmatpush.bf16.msra.mxu1 %v688_v15  ;;  %v676_v22 = vld [vmem:[#allocation6 + $0x18] sm:$0xff]  ;;  %v301_v26 = vld [vmem:[%s1074_s16 + $0x68] sm:$0xff]  ;;  %v675_v30 = vld [vmem:[#allocation6 + $0x10] sm:$0xff]  ;;  %v415_v55 = vstv %s414_s11  ;;  %p874_p1 = scmp.ne.s32.totalorder %s872_s24, %s873_s4 }
  0x38   : > { %v295_v18 = vadd.f32 %v293_v14, %v291_v12  ;;  %v686_v27 = vld [vmem:[#allocation8 + $0x28] sm:$0xff]  ;;  %v304_v31 = vld [vmem:[%s1074_s16 + $0x30] sm:$0xff]  ;;  %v308_v36 = vld [vmem:[%s1074_s16 + $0x38] sm:$0xff] }
  0x39   : > { %v298_v23 = vadd.f32 %v296_v19, %v294_v17  ;;  %v305_v32 = vld [vmem:[%s1074_s16 + $0x70] sm:$0xff]  ;;  %v674_v35 = vld [vmem:[#allocation6 + $0x8] sm:$0xff]  ;;  %v309_v37 = vld [vmem:[%s1074_s16 + $0x78] sm:$0xff]  ;;  %p875_p4 = pnand %p874_p1, %p1039_p3  ;;  %s877_s16 = scalar_lea.hbm %s1142_s5, 32 }
  0x3a   : > { %383 = vmatpush.bf16.msra.mxu0 %v678_v10  ;;  %v299_v24 = vadd.f32 %v297_v20, %v295_v18  ;;  %v673_v40 = vld [vmem:[#allocation6] sm:$0xff]  ;;  %v684_v43 = vld [vmem:[#allocation8 + $0x18] sm:$0xff]  ;;  %v683_v44 = vld [vmem:[#allocation8 + $0x10] sm:$0xff]  ;;  %p879_p2 = scmp.lt.s32.totalorder %s877_s16, %s873_s4 }
  0x3b   : > { %465 = vmatpush.bf16.msra.mxu1 %v687_v21  ;;  %v302_v28 = vadd.f32 %v300_v25, %v298_v23  ;;  %v685_v42 = vld [vmem:[#allocation8 + $0x20] sm:$0xff]  ;;  %v682_v45 = vld [vmem:[#allocation8 + $0x8] sm:$0xff]  ;;  %p876_p8 = pneg %p875_p4 }
  0x3c   : > { %v303_v29 = vadd.f32 %v301_v26, %v299_v24  ;;  %v681_v46 = vld [vmem:[#allocation8] sm:$0xff]  ;;  %p880_p9 = por %p879_p2, %p878_p11 }
  0x3d   : > { %v306_v33 = vadd.f32 %v304_v31, %v302_v28  ;;  %v762_v48 = vld [vmem:[%s1139_s2] ss:$0 sm:$0xff] }
  0x3e   : > { %384 = vmatpush.bf16.msra.mxu0 %v677_v16  ;;  %v307_v34 = vadd.f32 %v305_v32, %v303_v29  ;;  %p881_p10 = pnand %p880_p9, %p876_p8 }
  0x3f   : > { %466 = vmatpush.bf16.msra.mxu1 %v686_v27  ;;  %v310_v38 = vadd.f32 %v308_v36, %v306_v33 }
  0x40   : > { %v311_v39 = vadd.f32 %v309_v37, %v307_v34 }
  0x42   : > { %385 = vmatpush.bf16.msra.mxu0 %v676_v22  ;;  %v312_v41 = vpack.c.bf16 %v311_v39, %v310_v38 }
  0x43   : > { %467 = vmatpush.bf16.msra.mxu1 %v685_v42 }
  0x46   : > { %386 = vmatpush.bf16.msra.mxu0 %v675_v30 }
  0x47   : > { %468 = vmatpush.bf16.msra.mxu1 %v684_v43 }
  0x4a   : > { %387 = vmatpush.bf16.msra.mxu0 %v674_v35 }
  0x4b   : > { %469 = vmatpush.bf16.msra.mxu1 %v683_v44 }
  0x4e   : > { %388 = vmatpush.bf16.msra.mxu0 %v673_v40 }
  0x4f   : > { %470 = vmatpush.bf16.msra.mxu1 %v682_v45 }
  0x51   : > { %389 = vmatmul.bf16.vlgmr.msra.gmra.mxu0 %v312_v41 }
  0x53   : > { %471 = vmatpush.bf16.msra.mxu1 %v681_v46 }
  0xce   : > { %v390_v47 = vpop.f32.mrf.mxu0 }
  0xcf   : > { %v391_v49 = vadd.f32 %v762_v48, %v390_v47 }
  0xd1   : > { %763 = vtanh.f32 %v391_v49 }
  0xd6   : > { %v392_v50 = vpop.f32.mrf.mxu0 }
  0xd7   : > { %v393_v51 = vadd.f32 %v762_v48, %v392_v50  ;;  %v764_v52 = vpop.eup %763 }
  0xd9   : > { %765 = vtanh.f32 %v393_v51 }
  0xdf   : > { %v766_v53 = vpop.eup %765 }
  0xe0   : > { %v397_v54 = vpack.c.bf16 %v766_v53, %v764_v52 }
  0xe2   : > { %472 = vmatmul.bf16.vlgmr.msra.gmra.mxu1 %v397_v54 }
 0x15f   : > { %v473_v56 = vpop.f32.mrf.mxu1 }
 0x160   : > { %v474_v57 = vadd.f32 %v473_v56, %v415_v55 }
 0x162   : > { %478 = vst [vmem:[%s279_s27] sm:$0xff] %v474_v57 }
 0x167   : > { %v475_v58 = vpop.f32.mrf.mxu1 }
 0x168   : > { %v476_v59 = vadd.f32 %v475_v58, %v415_v55 }
 0x16a   : > { %479 = vst [vmem:[%s279_s27 + $0x8] sm:$0xff] %v476_v59 }
 0x16b   : > { %884 = shalt.err (!%p881_p10)
}
 0x16c   : > { %s934_s7 = smov 128   ;;  %s935_s11 = smov 8  }
 0x16d   : > { %700 = dma.vmem_to_hbm [thread:$0]  (%p1039_p3), %s494_s28, 256, %s496_s29, %s481_s6, %s934_s7, %s934_s7, %s935_s11  }
 0x16e PF: > { %s510_s9 = sand.u32 1, %s915_s20   ;;  %p1148_p12 = scmp.ge.s32.totalorder %s927_s23, 2 }
 0x16f   : > { %s511_s10 = scalar_lea.sflag [#allocation5], %s510_s9 }
 0x170   : > { %p714_p13 = pnand %p1148_p12, %p1004_p6 }
 0x172   : > { %p715_p0 = pneg %p714_p13 }
 0x174   : > { %910 = dma.done.wait (%p715_p0), %s511_s10, 256  }
 0x175   : > { %912 = vsyncadd (%p715_p0), %s511_s10, 4294967040  ;;  %p20_p5 = scmp.ge.s32.totalorder %s1029_s15, 4   ;;  %s1149_s20 = smov %s919_s21 }
 0x176   : > { %s1150_s21 = smov %s923_s22  ;;  %s1151_s22 = smov %s1045_s19 }
 0x177   : > { %s1152_s23 = smov %s1029_s15  ;;  %22 = sbr.rel (!%p20_p5) target bundleno = 8 (0x8), region = 93 }
 0x17c   :  { %517 = vsyncpa [#allocation4], 1 }
 0x17d   :  { %519 = vsyncpa [#allocation4 + $0x1], 1 }
 0x17e   :  { %520 = vsyncpa [#allocation7], 1 }
 0x17f   :  { %521 = vsyncpa [#allocation5], 1 }
 0x180   :  { %523 = vsyncpa [#allocation5 + $0x1], 1 }

</bundles_post_ra>
